<compile_context>
chip_gen: v5e
topology: v5e:2x2
jax: 0.10.0
libtpu: 0.0.40
codegen_flags: <defaults>
</compile_context>

<pallas_src>
import functools
import math

import jax
import jax.numpy as jnp
from jax.experimental import pallas as pl
from jax.experimental.pallas import tpu as pltpu


def _round_up(x, m):
    return ((x + m - 1) // m) * m


def _vmem_limit_bytes(resident_bytes):
    # 2x for double-buffering + headroom; floor at the v5e default scoped limit,
    # cap comfortably below v7x's 64 MiB physical VMEM.
    return int(min(max(2 * resident_bytes + (2 << 20), 16 << 20), 48 << 20))


def decoder_step_kernel(xh_ref, c0_ref, enc_ref, encp_ref, mask_ref,
                        wlstm_ref, blstm_ref, wh1_ref, v_ref,
                        wch_ref, wcc_ref, bc_ref,
                        co_ref, h_ref, c_ref, *, batch):
    c0 = c0_ref[...]                                   # (Bp, H) f32
    H = c0.shape[1]

    # ---- single time-step LSTM, fused input/hidden matmul (gate order i,f,g,o) ----
    gates = (jnp.dot(xh_ref[...], wlstm_ref[...],
                     preferred_element_type=jnp.float32) + blstm_ref[...])   # (Bp, 4H)
    # NOTE: at production H (multiple of 128) these gate slices are lane-aligned
    # views; keep that alignment when changing the weight layout.
    i_g = jax.nn.sigmoid(gates[:, 0:H])
    f_g = jax.nn.sigmoid(gates[:, H:2 * H])
    g_g = jnp.tanh(gates[:, 2 * H:3 * H])
    o_g = jax.nn.sigmoid(gates[:, 3 * H:4 * H])
    c_new = f_g * c0 + i_g * g_g
    h_new = o_g * jnp.tanh(c_new)
    h_ref[...] = h_new                                 # separate outputs: no concat copy
    c_ref[...] = c_new

    # ---- Luong attention (vectorized; enc-side projection hoisted to wrapper) ----
    h_bf = h_new.astype(jnp.bfloat16)
    s_part = jnp.dot(h_bf, wh1_ref[...],
                     preferred_element_type=jnp.float32)                     # (Bp, H)
    # TODO(synk): on v6e/v7x this elementwise path could run in bf16 (bf16 VALU/EUP);
    #             kept f32 so the same kernel stays correct/optimal on v5e.
    energy = jnp.tanh(encp_ref[...] + s_part[:, None, :])                    # (Bp, S, H) f32
    e = jnp.sum(energy * v_ref[...], axis=-1)                                # (Bp, S)

    # torch: F.softmax(energy (B,S), dim=0) -> softmax over the batch axis.
    # Exclude batch-padding rows so they do not perturb the dim-0 denominator.
    row = jax.lax.broadcasted_iota(jnp.int32, e.shape, 0)
    e = jnp.where(row < batch, e, -1e30)
    e_max = jnp.max(e, axis=0, keepdims=True)
    p = jnp.exp(e - e_max)
    soft = p * pl.reciprocal(jnp.sum(p, axis=0, keepdims=True), approx=True)
    a = soft * mask_ref[...]                                                 # (Bp, S)
    # zero-mask rows give a near-zero context, same as the eps-guarded reference
    a = a * pl.reciprocal(jnp.sum(a, axis=1, keepdims=True) + 1e-5, approx=True)
    context = jnp.sum(a[:, :, None] * enc_ref[...], axis=1)                  # (Bp, H) f32

    # ---- concat layer as two accumulating dots (no in-kernel concatenate) ----
    concat_out = jnp.tanh(
        jnp.dot(h_bf, wch_ref[...], preferred_element_type=jnp.float32)
        + jnp.dot(context.astype(jnp.bfloat16), wcc_ref[...],
                  preferred_element_type=jnp.float32)
        + bc_ref[...])
    co_ref[...] = concat_out.astype(co_ref.dtype)


def proj_kernel(co_ref, w_ref, b_ref, out_ref):
    # one lane-dense V tile of the output projection per grid step
    out_ref[...] = (jnp.dot(co_ref[...], w_ref[...],
                            preferred_element_type=jnp.float32) + b_ref[...])


def decoder_forward(params, inp_emb, last_hidden, encoder_outputs, inp_mask):
    """Pallas implementation of Decoder.forward (n_layers == 1, dropout p=0)."""
    h0_all, c0_all = last_hidden                       # (1, B, H) each
    B = min(h0_all.shape[1], inp_emb.shape[0])
    x = inp_emb[-B:]                                   # dropout(p=0) == identity
    h0 = h0_all[-1]
    c0 = c0_all[-1]

    S = encoder_outputs.shape[0]
    H = h0.shape[1]
    V = params["w_out"].shape[0]

    # ---- batch padded to a sublane multiple (MXU / vreg M-dim utilization) ----
    Bp = _round_up(B, 8)

    def bpad(arr):
        return jnp.pad(arr, ((0, Bp - B),) + ((0, 0),) * (arr.ndim - 1))

    # ---- glue: fuse / transpose / pad / cast so the kernel does plain matmuls ----
    xh = bpad(jnp.concatenate([x, h0], axis=1)).astype(jnp.bfloat16)         # (Bp, E+H)
    c0_p = bpad(c0)                                                          # (Bp, H) f32
    enc_f32 = bpad(jnp.transpose(encoder_outputs, (1, 0, 2)))                # (Bp, S, H)
    mask_bt = bpad(inp_mask.T)                                               # (Bp, S)

    w_lstm = jnp.concatenate([params["w_ih"].T, params["w_hh"].T],
                             axis=0).astype(jnp.bfloat16)                    # (E+H, 4H)
    b_lstm = (params["b_ih"] + params["b_hh"]).reshape(1, -1)                # (1, 4H) f32

    wh = params["w_attn"]                              # (H, 2H); cat order [h, enc]
    wh1_t = wh[:, :H].T.astype(jnp.bfloat16)           # (H, H)  h-side
    wh2_t = wh[:, H:].T                                # (H, H)  enc-side (hoisted)
    v_row = params["v_attn"].reshape(1, -1)            # (1, H)  f32

    # h-independent attention term, hoisted out of the per-step kernel
    # (amortized across decode steps in an autoregressive loop).
    enc_proj = jnp.einsum("bsh,hk->bsk", enc_f32, wh2_t).astype(jnp.bfloat16)
    enc_bt = enc_f32.astype(jnp.bfloat16)

    wc_t = params["w_concat"].T                        # (2H, H); cat order [rnn, ctx]
    wc_h = wc_t[:H].astype(jnp.bfloat16)
    wc_c = wc_t[H:].astype(jnp.bfloat16)
    bc = params["b_concat"].reshape(1, -1)             # (1, H) f32

    step_inputs = (xh, c0_p, enc_bt, enc_proj, mask_bt,
                   w_lstm, b_lstm, wh1_t, v_row, wc_h, wc_c, bc)

    out_shapes1 = (
        jax.ShapeDtypeStruct((Bp, H), jnp.bfloat16),   # concat_out (MXU input of call 2)
        jax.ShapeDtypeStruct((Bp, H), jnp.float32),    # h_new
        jax.ShapeDtypeStruct((Bp, H), jnp.float32),    # c_new
    )
    resident1 = sum(int(a.size) * a.dtype.itemsize for a in step_inputs)
    resident1 += Bp * H * (2 + 4 + 4)

    vmem = pl.BlockSpec(memory_space=pltpu.MemorySpace.VMEM)
    concat_out, h_new, c_new = pl.pallas_call(
        functools.partial(decoder_step_kernel, batch=B),
        out_shape=out_shapes1,
        in_specs=[vmem] * len(step_inputs),
        out_specs=(vmem, vmem, vmem),
        compiler_params=pltpu.CompilerParams(
            vmem_limit_bytes=_vmem_limit_bytes(resident1)),
    )(*step_inputs)

    # ---- output projection, tiled over V (streamed weight, megacore-parallel) ----
    TILE_V_MAX = 1024                                  # multiple of 256 (v6e/v7x MXU width)
    Vp = _round_up(V, 256)
    if Vp > TILE_V_MAX:
        Vp = _round_up(V, TILE_V_MAX)
        tile_v = TILE_V_MAX
    else:
        tile_v = Vp
    num_tiles = Vp // tile_v

    wout_t = params["w_out"].T                         # (H, V)
    bout = params["b_out"].reshape(1, -1)              # (1, V)
    if Vp != V:
        wout_t = jnp.pad(wout_t, ((0, 0), (0, Vp - V)))
        bout = jnp.pad(bout, ((0, 0), (0, Vp - V)))
    wout_t = wout_t.astype(jnp.bfloat16)

    # resident set: concat_out + double-buffered (weight tile, bias tile, out tile)
    resident2 = (Bp * H * 2) + 2 * (H * tile_v * 2 + tile_v * 4 + Bp * tile_v * 4)
    logits_p = pl.pallas_call(
        proj_kernel,
        out_shape=jax.ShapeDtypeStruct((Bp, Vp), jnp.float32),
        grid=(num_tiles,),
        in_specs=[pl.BlockSpec((Bp, H), lambda j: (0, 0)),
                  pl.BlockSpec((H, tile_v), lambda j: (0, j)),
                  pl.BlockSpec((1, tile_v), lambda j: (0, j))],
        out_specs=pl.BlockSpec((Bp, tile_v), lambda j: (0, j)),
        compiler_params=pltpu.CompilerParams(
            dimension_semantics=("parallel",),
            vmem_limit_bytes=_vmem_limit_bytes(resident2)),
    )(concat_out, wout_t, bout)

    logits = logits_p[:B, :V]
    return logits, (h_new[:B][None, :, :], c_new[:B][None, :, :])


def decoder_reference(params, inp_emb, last_hidden, encoder_outputs, inp_mask):
    """Plain-JAX (f32) mirror of the PyTorch forward for correctness checking."""
    h0_all, c0_all = last_hidden
    B = min(h0_all.shape[1], inp_emb.shape[0])
    x = inp_emb[-B:]
    h0, c0 = h0_all[-1], c0_all[-1]
    H = h0.shape[1]
    gates = (x @ params["w_ih"].T + params["b_ih"] +
             h0 @ params["w_hh"].T + params["b_hh"])
    i = jax.nn.sigmoid(gates[:, :H])
    f = jax.nn.sigmoid(gates[:, H:2 * H])
    g = jnp.tanh(gates[:, 2 * H:3 * H])
    o = jax.nn.sigmoid(gates[:, 3 * H:])
    c_new = f * c0 + i * g
    h_new = o * jnp.tanh(c_new)

    enc_bt = jnp.transpose(encoder_outputs, (1, 0, 2))          # (B, S, H)
    S = enc_bt.shape[1]
    Hrep = jnp.broadcast_to(h_new[:, None, :], (B, S, H))
    energy = jnp.tanh(jnp.concatenate([Hrep, enc_bt], axis=2) @ params["w_attn"].T)
    e = jnp.einsum("h,bsh->bs", params["v_attn"], energy)        # (B, S)
    soft = jax.nn.softmax(e, axis=0)
    a = soft * inp_mask.T
    a = a / (jnp.sum(a, axis=1, keepdims=True) + 1e-5)
    context = jnp.einsum("bs,bsh->bh", a, enc_bt)
    concat_out = jnp.tanh(jnp.concatenate([h_new, context], axis=1)
                          @ params["w_concat"].T + params["b_concat"])
    logits = concat_out @ params["w_out"].T + params["b_out"]
    return logits, (h_new[None], c_new[None])


if __name__ == "__main__":
    B, S, E, H, V = 2, 8, 16, 32, 64

    key = jax.random.PRNGKey(0)
    keys = jax.random.split(key, 16)

    def u(k, shape, scale):
        return jax.random.uniform(k, shape, jnp.float32, -scale, scale)

    kh = 1.0 / math.sqrt(H)
    k2h = 1.0 / math.sqrt(2 * H)
    params = dict(
        w_ih=u(keys[0], (4 * H, E), kh),
        w_hh=u(keys[1], (4 * H, H), kh),
        b_ih=u(keys[2], (4 * H,), kh),
        b_hh=u(keys[3], (4 * H,), kh),
        w_out=u(keys[4], (V, H), kh),
        b_out=u(keys[5], (V,), kh),
        w_concat=u(keys[6], (H, 2 * H), k2h),
        b_concat=u(keys[7], (H,), k2h),
        w_attn=u(keys[8], (H, 2 * H), k2h),
        v_attn=kh * jax.random.normal(keys[9], (H,), jnp.float32),
    )

    inp_emb = jax.random.normal(keys[10], (B, E), jnp.float32)
    h0 = jax.random.normal(keys[11], (1, B, H), jnp.float32)
    c0 = jax.random.normal(keys[12], (1, B, H), jnp.float32)
    encoder_outputs = jax.random.normal(keys[13], (S, B, H), jnp.float32)
    inp_mask = jnp.ones((S, B), jnp.float32).at[6:, 1].set(0.0)

    logits, (h_new, c_new) = decoder_forward(
        params, inp_emb, (h0, c0), encoder_outputs, inp_mask)
    jax.block_until_ready((logits, h_new, c_new))

    ref_logits, (ref_h, ref_c) = decoder_reference(
        params, inp_emb, (h0, c0), encoder_outputs, inp_mask)
    # kernel runs bf16 MXU operands with f32 accumulation; reference is pure f32
    assert jnp.allclose(logits, ref_logits, atol=2e-2, rtol=2e-2)
    assert jnp.allclose(h_new, ref_h, atol=2e-2, rtol=2e-2)
    assert jnp.allclose(c_new, ref_c, atol=2e-2, rtol=2e-2)

    print("KERNEL_OK")
</pallas_src>

<mosaic_0001>
module attributes {stable_mosaic.version = 11 : i64} {
  func.func @decoder_step_kernel(%arg0: memref<8x48xbf16, #tpu.memory_space<vmem>>, %arg1: memref<8x32xf32, #tpu.memory_space<vmem>>, %arg2: memref<8x8x32xbf16, #tpu.memory_space<vmem>>, %arg3: memref<8x8x32xbf16, #tpu.memory_space<vmem>>, %arg4: memref<8x8xf32, #tpu.memory_space<vmem>>, %arg5: memref<48x128xbf16, #tpu.memory_space<vmem>>, %arg6: memref<1x128xf32, #tpu.memory_space<vmem>>, %arg7: memref<32x32xbf16, #tpu.memory_space<vmem>>, %arg8: memref<1x32xf32, #tpu.memory_space<vmem>>, %arg9: memref<32x32xbf16, #tpu.memory_space<vmem>>, %arg10: memref<32x32xbf16, #tpu.memory_space<vmem>>, %arg11: memref<1x32xf32, #tpu.memory_space<vmem>>, %arg12: memref<8x32xbf16, #tpu.memory_space<vmem>>, %arg13: memref<8x32xf32, #tpu.memory_space<vmem>>, %arg14: memref<8x32xf32, #tpu.memory_space<vmem>>) attributes {dimension_semantics = [], scalar_prefetch = 0 : i64, scratch_operands = 0 : i64, tpu.core_type = #tpu.core_type<tc>} {
    %c0 = arith.constant 0 : index
    %c0_0 = arith.constant 0 : index
    %0 = vector.load %arg1[%c0, %c0_0] : memref<8x32xf32, #tpu.memory_space<vmem>>, vector<8x32xf32>
    %c0_1 = arith.constant 0 : index
    %c0_2 = arith.constant 0 : index
    %1 = vector.load %arg0[%c0_1, %c0_2] : memref<8x48xbf16, #tpu.memory_space<vmem>>, vector<8x48xbf16>
    %c0_3 = arith.constant 0 : index
    %c0_4 = arith.constant 0 : index
    %2 = vector.load %arg5[%c0_3, %c0_4] : memref<48x128xbf16, #tpu.memory_space<vmem>>, vector<48x128xbf16>
    %cst = arith.constant dense<0.000000e+00> : vector<8x128xf32>
    %3 = tpu.matmul %1, %2, %cst {dimension_numbers = #tpu.dot_dimension_numbers<[1], [0], [0], [1], [0, 0, 1, 1], [], []>} : vector<8x48xbf16>, vector<48x128xbf16>, vector<8x128xf32> -> vector<8x128xf32>
    %c0_5 = arith.constant 0 : index
    %c0_6 = arith.constant 0 : index
    %4 = vector.load %arg6[%c0_5, %c0_6] : memref<1x128xf32, #tpu.memory_space<vmem>>, vector<1x128xf32>
    %5 = vector.broadcast %4 : vector<1x128xf32> to vector<8x128xf32>
    %6 = arith.addf %3, %5 : vector<8x128xf32>
    %7 = vector.extract_strided_slice %6 {offsets = [0, 0], sizes = [8, 32], strides = [1, 1]} : vector<8x128xf32> to vector<8x32xf32>
    %8 = arith.negf %7 : vector<8x32xf32>
    %9 = math.exp %8 : vector<8x32xf32>
    %cst_7 = arith.constant 1.000000e+00 : f32
    %10 = vector.broadcast %cst_7 : f32 to vector<8x32xf32>
    %11 = arith.addf %10, %9 : vector<8x32xf32>
    %12 = arith.divf %10, %11 : vector<8x32xf32>
    %13 = vector.extract_strided_slice %6 {offsets = [0, 32], sizes = [8, 32], strides = [1, 1]} : vector<8x128xf32> to vector<8x32xf32>
    %14 = arith.negf %13 : vector<8x32xf32>
    %15 = math.exp %14 : vector<8x32xf32>
    %cst_8 = arith.constant 1.000000e+00 : f32
    %16 = vector.broadcast %cst_8 : f32 to vector<8x32xf32>
    %17 = arith.addf %16, %15 : vector<8x32xf32>
    %18 = arith.divf %16, %17 : vector<8x32xf32>
    %19 = vector.extract_strided_slice %6 {offsets = [0, 64], sizes = [8, 32], strides = [1, 1]} : vector<8x128xf32> to vector<8x32xf32>
    %20 = math.tanh %19 : vector<8x32xf32>
    %21 = vector.extract_strided_slice %6 {offsets = [0, 96], sizes = [8, 32], strides = [1, 1]} : vector<8x128xf32> to vector<8x32xf32>
    %22 = arith.negf %21 : vector<8x32xf32>
    %23 = math.exp %22 : vector<8x32xf32>
    %cst_9 = arith.constant 1.000000e+00 : f32
    %24 = vector.broadcast %cst_9 : f32 to vector<8x32xf32>
    %25 = arith.addf %24, %23 : vector<8x32xf32>
    %26 = arith.divf %24, %25 : vector<8x32xf32>
    %27 = arith.mulf %18, %0 : vector<8x32xf32>
    %28 = arith.mulf %12, %20 : vector<8x32xf32>
    %29 = arith.addf %27, %28 : vector<8x32xf32>
    %30 = math.tanh %29 : vector<8x32xf32>
    %31 = arith.mulf %26, %30 : vector<8x32xf32>
    %c0_10 = arith.constant 0 : index
    %c0_11 = arith.constant 0 : index
    %32 = vector.load %arg13[%c0_10, %c0_11] : memref<8x32xf32, #tpu.memory_space<vmem>>, vector<8x32xf32>
    tpu.vector_store %arg13[%c0_10, %c0_11], %31 {strides = array<i32>} : memref<8x32xf32, #tpu.memory_space<vmem>>, vector<8x32xf32>,
    %c0_12 = arith.constant 0 : index
    %c0_13 = arith.constant 0 : index
    %33 = vector.load %arg14[%c0_12, %c0_13] : memref<8x32xf32, #tpu.memory_space<vmem>>, vector<8x32xf32>
    tpu.vector_store %arg14[%c0_12, %c0_13], %29 {strides = array<i32>} : memref<8x32xf32, #tpu.memory_space<vmem>>, vector<8x32xf32>,
    %34 = arith.truncf %31 : vector<8x32xf32> to vector<8x32xbf16>
    %c0_14 = arith.constant 0 : index
    %c0_15 = arith.constant 0 : index
    %35 = vector.load %arg7[%c0_14, %c0_15] : memref<32x32xbf16, #tpu.memory_space<vmem>>, vector<32x32xbf16>
    %cst_16 = arith.constant dense<0.000000e+00> : vector<8x32xf32>
    %36 = tpu.matmul %34, %35, %cst_16 {dimension_numbers = #tpu.dot_dimension_numbers<[1], [0], [0], [1], [0, 0, 1, 1], [], []>} : vector<8x32xbf16>, vector<32x32xbf16>, vector<8x32xf32> -> vector<8x32xf32>
    %c0_17 = arith.constant 0 : index
    %c0_18 = arith.constant 0 : index
    %c0_19 = arith.constant 0 : index
    %37 = vector.load %arg3[%c0_17, %c0_18, %c0_19] : memref<8x8x32xbf16, #tpu.memory_space<vmem>>, vector<8x8x32xbf16>
    %38 = vector.shape_cast %36 : vector<8x32xf32> to vector<8x1x32xf32>
    %39 = arith.extf %37 : vector<8x8x32xbf16> to vector<8x8x32xf32>
    %40 = vector.broadcast %38 : vector<8x1x32xf32> to vector<8x8x32xf32>
    %41 = arith.addf %39, %40 : vector<8x8x32xf32>
    %42 = math.tanh %41 : vector<8x8x32xf32>
    %c0_20 = arith.constant 0 : index
    %c0_21 = arith.constant 0 : index
    %43 = vector.load %arg8[%c0_20, %c0_21] : memref<1x32xf32, #tpu.memory_space<vmem>>, vector<1x32xf32>
    %44 = vector.shape_cast %43 : vector<1x32xf32> to vector<1x1x32xf32>
    %45 = vector.broadcast %44 : vector<1x1x32xf32> to vector<8x8x32xf32>
    %46 = arith.mulf %42, %45 : vector<8x8x32xf32>
    %cst_22 = arith.constant dense<0.000000e+00> : vector<8x8xf32>
    %47 = vector.multi_reduction <add>, %46, %cst_22 [2] : vector<8x8x32xf32> to vector<8x8xf32>
    %48 = tpu.iota {dimensions = array<i32: 0>} : vector<8x8xi32>
    %c2_i32 = arith.constant 2 : i32
    %49 = vector.broadcast %c2_i32 : i32 to vector<8x8xi32>
    %50 = arith.cmpi slt, %48, %49 : vector<8x8xi32>
    %cst_23 = arith.constant -1.000000e+30 : f32
    %51 = vector.broadcast %cst_23 : f32 to vector<8x8xf32>
    %52 = arith.select %50, %47, %51 : vector<8x8xi1>, vector<8x8xf32>
    %cst_24 = arith.constant dense<0xFF800000> : vector<8xf32>
    %53 = vector.multi_reduction <maximumf>, %52, %cst_24 [0] : vector<8x8xf32> to vector<8xf32>
    %54 = vector.shape_cast %53 : vector<8xf32> to vector<1x8xf32>
    %55 = vector.broadcast %54 : vector<1x8xf32> to vector<8x8xf32>
    %56 = arith.subf %52, %55 : vector<8x8xf32>
    %57 = math.exp %56 : vector<8x8xf32>
    %cst_25 = arith.constant dense<0.000000e+00> : vector<8xf32>
    %58 = vector.multi_reduction <add>, %57, %cst_25 [0] : vector<8x8xf32> to vector<8xf32>
    %59 = vector.shape_cast %58 : vector<8xf32> to vector<1x8xf32>
    %60 = tpu.reciprocal %59 {approx = true} : vector<1x8xf32> -> vector<1x8xf32>
    %61 = vector.broadcast %60 : vector<1x8xf32> to vector<8x8xf32>
    %62 = arith.mulf %57, %61 : vector<8x8xf32>
    %c0_26 = arith.constant 0 : index
    %c0_27 = arith.constant 0 : index
    %63 = vector.load %arg4[%c0_26, %c0_27] : memref<8x8xf32, #tpu.memory_space<vmem>>, vector<8x8xf32>
    %64 = arith.mulf %62, %63 : vector<8x8xf32>
    %cst_28 = arith.constant dense<0.000000e+00> : vector<8xf32>
    %65 = vector.multi_reduction <add>, %64, %cst_28 [1] : vector<8x8xf32> to vector<8xf32>
    %66 = vector.shape_cast %65 : vector<8xf32> to vector<8x1xf32>
    %cst_29 = arith.constant 9.99999974E-6 : f32
    %67 = vector.broadcast %cst_29 : f32 to vector<8x1xf32>
    %68 = arith.addf %66, %67 : vector<8x1xf32>
    %69 = tpu.reciprocal %68 {approx = true} : vector<8x1xf32> -> vector<8x1xf32>
    %70 = vector.broadcast %69 : vector<8x1xf32> to vector<8x8xf32>
    %71 = arith.mulf %64, %70 : vector<8x8xf32>
    %72 = vector.shape_cast %71 : vector<8x8xf32> to vector<8x8x1xf32>
    %c0_30 = arith.constant 0 : index
    %c0_31 = arith.constant 0 : index
    %c0_32 = arith.constant 0 : index
    %73 = vector.load %arg2[%c0_30, %c0_31, %c0_32] : memref<8x8x32xbf16, #tpu.memory_space<vmem>>, vector<8x8x32xbf16>
    %74 = arith.extf %73 : vector<8x8x32xbf16> to vector<8x8x32xf32>
    %75 = vector.broadcast %72 : vector<8x8x1xf32> to vector<8x8x32xf32>
    %76 = arith.mulf %75, %74 : vector<8x8x32xf32>
    %cst_33 = arith.constant dense<0.000000e+00> : vector<8x32xf32>
    %77 = vector.multi_reduction <add>, %76, %cst_33 [1] : vector<8x8x32xf32> to vector<8x32xf32>
    %c0_34 = arith.constant 0 : index
    %c0_35 = arith.constant 0 : index
    %78 = vector.load %arg9[%c0_34, %c0_35] : memref<32x32xbf16, #tpu.memory_space<vmem>>, vector<32x32xbf16>
    %cst_36 = arith.constant dense<0.000000e+00> : vector<8x32xf32>
    %79 = tpu.matmul %34, %78, %cst_36 {dimension_numbers = #tpu.dot_dimension_numbers<[1], [0], [0], [1], [0, 0, 1, 1], [], []>} : vector<8x32xbf16>, vector<32x32xbf16>, vector<8x32xf32> -> vector<8x32xf32>
    %80 = arith.truncf %77 : vector<8x32xf32> to vector<8x32xbf16>
    %c0_37 = arith.constant 0 : index
    %c0_38 = arith.constant 0 : index
    %81 = vector.load %arg10[%c0_37, %c0_38] : memref<32x32xbf16, #tpu.memory_space<vmem>>, vector<32x32xbf16>
    %cst_39 = arith.constant dense<0.000000e+00> : vector<8x32xf32>
    %82 = tpu.matmul %80, %81, %cst_39 {dimension_numbers = #tpu.dot_dimension_numbers<[1], [0], [0], [1], [0, 0, 1, 1], [], []>} : vector<8x32xbf16>, vector<32x32xbf16>, vector<8x32xf32> -> vector<8x32xf32>
    %83 = arith.addf %79, %82 : vector<8x32xf32>
    %c0_40 = arith.constant 0 : index
    %c0_41 = arith.constant 0 : index
    %84 = vector.load %arg11[%c0_40, %c0_41] : memref<1x32xf32, #tpu.memory_space<vmem>>, vector<1x32xf32>
    %85 = vector.broadcast %84 : vector<1x32xf32> to vector<8x32xf32>
    %86 = arith.addf %83, %85 : vector<8x32xf32>
    %87 = math.tanh %86 : vector<8x32xf32>
    %88 = arith.truncf %87 : vector<8x32xf32> to vector<8x32xbf16>
    %c0_42 = arith.constant 0 : index
    %c0_43 = arith.constant 0 : index
    %89 = vector.load %arg12[%c0_42, %c0_43] : memref<8x32xbf16, #tpu.memory_space<vmem>>, vector<8x32xbf16>
    tpu.vector_store %arg12[%c0_42, %c0_43], %88 {strides = array<i32>} : memref<8x32xbf16, #tpu.memory_space<vmem>>, vector<8x32xbf16>,
    return
  }
}

</mosaic_0001>

<bundles_post_ra>
// kernel: tpu_custom_call.1
= control target key start
LH: loop header
LB: loop body
LE: loop exit
PB: predicated region body
PF: predicated region fallthrough
CT: control target
= control target key end

     0   :  { %20 = vsyncpa [#allocation3], 0  ;;  %s1421_s0 = inlined_call_operand.hbm [shape: bf16[8,48], index: 0, kind: input, shape index: {}]   ;;  %s1422_s1 = inlined_call_operand.hbm [shape: f32[8,32], index: 1, kind: input, shape index: {}]   ;;  %s1423_s2 = inlined_call_operand.hbm [shape: bf16[8,8,32], index: 2, kind: input, shape index: {}]   ;;  %s1424_s3 = inlined_call_operand.hbm [shape: bf16[8,8,32], index: 3, kind: input, shape index: {}]   ;;  %s1425_s4 = inlined_call_operand.hbm [shape: f32[8,8], index: 4, kind: input, shape index: {}]   ;;  %s1426_s5 = inlined_call_operand.hbm [shape: bf16[48,128], index: 5, kind: input, shape index: {}]   ;;  %s1427_s6 = inlined_call_operand.vmem [shape: f32[1,128], index: 6, kind: input, shape index: {}]   ;;  %s1428_s7 = inlined_call_operand.hbm [shape: bf16[32,32], index: 7, kind: input, shape index: {}]   ;;  %s1429_s8 = inlined_call_operand.vmem [shape: f32[1,32], index: 8, kind: input, shape index: {}]   ;;  %s1430_s9 = inlined_call_operand.hbm [shape: bf16[32,32], index: 9, kind: input, shape index: {}]   ;;  %s1431_s10 = inlined_call_operand.hbm [shape: bf16[32,32], index: 10, kind: input, shape index: {}]   ;;  %s1432_s11 = inlined_call_operand.vmem [shape: f32[1,32], index: 11, kind: input, shape index: {}]   ;;  %s1433_s12 = inlined_call_operand.hbm [shape: bf16[8,32], index: 12, kind: output, shape index: {0}]   ;;  %s1434_s13 = inlined_call_operand.hbm [shape: f32[8,32], index: 13, kind: output, shape index: {1}]   ;;  %s1435_s14 = inlined_call_operand.hbm [shape: f32[8,32], index: 14, kind: output, shape index: {2}]  }
   0x1   :  { %21 = vsyncpa [#allocation6], 0 }
   0x2   :  { %22 = vsyncpa [#allocation9], 0 }
   0x3   :  { %23 = vsyncpa [#allocation12], 0 }
   0x4   :  { %24 = vsyncpa [#allocation15], 0 }
   0x5   :  { %25 = vsyncpa [#allocation4], 0  ;;  %s43_s15 = sshll.u32 %s1422_s1, 4  ;;  %s44_s15 = int_to_ptr.hbm [resolvable:$true] %s43_s15 }
   0x6   :  { %26 = vsyncpa [#allocation19], 0  ;;  %s1207_s16 = smov [#allocation5]   ;;  %s66_s20 = sshll.u32 %s1424_s3, 4  ;;  %s67_s20 = int_to_ptr.hbm [resolvable:$true] %s66_s20 }
   0x7   :  { %s45_s17 = sshll.u32 %s1207_s16, 4  ;;  %s1208_s21 = smov [#allocation8]   ;;  %s46_s17 = int_to_ptr.vmem [resolvable:$true] %s45_s17 }
   0x8   :  { %48 = dma.hbm_to_vmem [thread:$0]  %s44_s15, 128, %s46_s17, [#allocation6]  }
   0x9   :  { %s68_s22 = sshll.u32 %s1208_s21, 4  ;;  %s90_s25 = sshll.u32 %s1426_s5, 4  ;;  %s69_s22 = int_to_ptr.vmem [resolvable:$true] %s68_s22  ;;  %s91_s25 = int_to_ptr.hbm [resolvable:$true] %s90_s25 }
   0xa   :  { %s1209_s1 = smov 64   ;;  %s1210_s26 = smov 4  }
   0xb   :  { %74 = dma.hbm_to_vmem [thread:$0]  %s67_s20, 512, %s69_s22, [#allocation9], %s1209_s1, %s1209_s1, %s1210_s26  }
   0xc   :  { %s120_s29 = sshll.u32 %s1430_s9, 4  ;;  %s1211_s3 = smov [#allocation11]   ;;  %s121_s29 = int_to_ptr.hbm [resolvable:$true] %s120_s29 }
   0xd   :  { %s92_s30 = sshll.u32 %s1211_s3, 4  ;;  %s1212_s5 = smov [#allocation14]   ;;  %s93_s30 = int_to_ptr.vmem [resolvable:$true] %s92_s30 }
   0xe   :  { %98 = dma.hbm_to_vmem [thread:$0]  %s91_s25, 384, %s93_s30, [#allocation12], %s1209_s1, %s1209_s1, %s1210_s26  }
   0xf   :  { %s122_s15 = sshll.u32 %s1212_s5, 4  ;;  %s32_s18 = sshll.u32 %s1421_s0, 4  ;;  %s123_s15 = int_to_ptr.vmem [resolvable:$true] %s122_s15  ;;  %s33_s18 = int_to_ptr.hbm [resolvable:$true] %s32_s18 }
  0x10   :  { %128 = dma.hbm_to_vmem [thread:$0]  %s121_s29, 256, %s123_s15, [#allocation15], %s1209_s1, %s1209_s1, %s1210_s26  }
  0x11   :  { %s53_s20 = sshll.u32 %s1423_s2, 4  ;;  %s1213_s21 = smov [#allocation2]   ;;  %s54_s20 = int_to_ptr.hbm [resolvable:$true] %s53_s20 }
  0x12   :  { %s34_s22 = sshll.u32 %s1213_s21, 4  ;;  %s1214_s23 = smov [#allocation7]   ;;  %s35_s22 = int_to_ptr.vmem [resolvable:$true] %s34_s22 }
  0x13   :  { %37 = dma.hbm_to_vmem [thread:$0]  %s33_s18, 64, %s35_s22, [#allocation3]  }
  0x14   :  { %s55_s24 = sshll.u32 %s1214_s23, 4  ;;  %s80_s0 = sshll.u32 %s1425_s4, 4  ;;  %s56_s24 = int_to_ptr.vmem [resolvable:$true] %s55_s24  ;;  %s81_s0 = int_to_ptr.hbm [resolvable:$true] %s80_s0 }
  0x15   :  { %61 = dma.hbm_to_vmem [thread:$0]  %s54_s20, 512, %s56_s24, [#allocation6], %s1209_s1, %s1209_s1, %s1210_s26  }
  0x16   :  { %s105_s2 = sshll.u32 %s1428_s7, 4  ;;  %s1215_s3 = smov [#allocation10]   ;;  %s106_s2 = int_to_ptr.hbm [resolvable:$true] %s105_s2 }
  0x17   :  { %s82_s30 = sshll.u32 %s1215_s3, 4  ;;  %s1216_s5 = smov [#allocation13]   ;;  %s83_s30 = int_to_ptr.vmem [resolvable:$true] %s82_s30 }
  0x18   :  { %85 = dma.hbm_to_vmem [thread:$0]  %s81_s0, 128, %s83_s30, [#allocation9]  }
  0x19   :  { %s107_s15 = sshll.u32 %s1216_s5, 4  ;;  %s133_s4 = sshll.u32 %s1431_s10, 4  ;;  %s108_s15 = int_to_ptr.vmem [resolvable:$true] %s107_s15  ;;  %s134_s4 = int_to_ptr.hbm [resolvable:$true] %s133_s4 }
  0x1a   :  { %113 = dma.hbm_to_vmem [thread:$0]  %s106_s2, 256, %s108_s15, [#allocation12], %s1209_s1, %s1209_s1, %s1210_s26  }
  0x1b   :  { %s1217_s18 = smov [#allocation16]  }
  0x1c   :  { %s135_s9 = sshll.u32 %s1217_s18, 4  ;;  %s136_s9 = int_to_ptr.vmem [resolvable:$true] %s135_s9 }
  0x1d   :  { %141 = dma.hbm_to_vmem [thread:$0]  %s134_s4, 256, %s136_s9, [#allocation15], %s1209_s1, %s1209_s1, %s1210_s26  }
  0x1e   :  { %1193 = dma.done.wait [#allocation3], 64  }
  0x1f   :  { %1194 = vsyncadd [#allocation3], 4294967232 }
  0x20   :  { %1195 = dma.done.wait [#allocation6], 640  }
  0x21   :  { %1196 = vsyncadd [#allocation6], 4294966656 }
  0x22   :  { %1197 = dma.done.wait [#allocation9], 640  }
  0x23   :  { %1198 = vsyncadd [#allocation9], 4294966656 }
  0x24   :  { %1199 = dma.done.wait [#allocation12], 640  }
  0x25   :  { %1200 = vsyncadd [#allocation12], 4294966656 }
  0x26   :  { %1201 = dma.done.wait [#allocation15], 512  }
  0x27   :  { %1202 = vsyncadd [#allocation15], 4294966784  ;;  %v806_v0 = vld [vmem:[#allocation11 + $0x10] sm:$0xff]  ;;  %v805_v1 = vld [vmem:[#allocation11 + $0x8] sm:$0xff]  ;;  %vm211_vm0 = vcmask 392192   ;;  %s1218_s26 = smov 32  }
  0x28   :  { %220 = vmatpush.bf16.msra.mxu0 %v806_v0  ;;  %v804_v2 = vld [vmem:[#allocation11] sm:$0xff]  ;;  %v182_v3 = vld [vmem:[#allocation2] sm:$0xf]  ;;  %v181_v9 = vld [vmem:[#allocation5] sm:$0xff]  ;;  %vm273_vm5 = vcmask 261120   ;;  %vm429_vm6 = vcmask 1041409  }
  0x29   :  { %v870_v4 = vld [vmem:[%s1427_s6] ss:$0 sm:$0xff]  ;;  %v808_v30 = vld [vmem:[#allocation13 + $0x8] sm:$0xff]  ;;  %v810_v31 = vld [vmem:[#allocation14 + $0x8] sm:$0xff]  ;;  %vm431_vm7 = vcmask 1042434   ;;  %vm433_vm8 = vcmask 1043459  }
  0x2a   :  { %309 = vmatpush.bf16.msra.mxu1 %v808_v30  ;;  %695 = vmatpush.bf16.msra.mxu3 %v810_v31  ;;  %v807_v32 = vld [vmem:[#allocation13] sm:$0xff]  ;;  %v809_v33 = vld [vmem:[#allocation14] sm:$0xff]  ;;  %v845_v39 = vld [vmem:[#allocation8 + $0x8] sm:$0xff]   ;;  %vm435_vm9 = vcmask 1044484   ;;  %vm437_vm10 = vcmask 1045509   ;;  %vm439_vm11 = vcmask 1046534  }
  0x2b   :  { %v814_v38 = vld [vmem:[#allocation8] sm:$0xff]   ;;  %v847_v41 = vld [vmem:[#allocation8 + $0x18] sm:$0xff]   ;;  %v819_v43 = vunpack.c.l.bf16 %v845_v39  ;;  %v820_v45 = vunpack.c.h.bf16 %v845_v39  ;;  %v846_v50 = vld [vmem:[#allocation8 + $0x10] sm:$0xff]   ;;  %vm441_vm12 = vcmask 1047559   ;;  %vm445_vm14 = vcmask 64512   ;;  %s729_s21 = sshll.u32 %s1434_s13, 4  ;;  %s730_s21 = int_to_ptr.hbm [resolvable:$true] %s729_s21 }
  0x2c   :  { %221 = vmatpush.bf16.msra.mxu0 %v805_v1  ;;  %v815_v40 = vunpack.c.l.bf16 %v814_v38  ;;  %v816_v44 = vunpack.c.h.bf16 %v814_v38  ;;  %v827_v51 = vunpack.c.l.bf16 %v847_v41  ;;  %v824_v59 = vunpack.c.h.bf16 %v846_v50  ;;  %s1220_s22 = smov [#allocation18]   ;;  %s740_s27 = sshll.u32 %s1435_s14, 4  ;;  %s741_s27 = int_to_ptr.hbm [resolvable:$true] %s740_s27 }
  0x2d   :  { %s727_s23 = sshll.u32 %s1220_s22, 4  ;;  %s1221_s0 = smov [#allocation20]   ;;  %vm709_vm15 = vcmask 257024   ;;  %s728_s23 = int_to_ptr.vmem [resolvable:$true] %s727_s23 }
  0x2e   :  { %310 = vmatpush.bf16.msra.mxu1 %v807_v32  ;;  %696 = vmatpush.bf16.msra.mxu3 %v809_v33  ;;  %s738_s28 = sshll.u32 %s1221_s0, 4  ;;  %s1222_s13 = smov [#allocation17]   ;;  %s739_s28 = int_to_ptr.vmem [resolvable:$true] %s738_s28 }
  0x2f   :  { %s716_s3 = sshll.u32 %s1222_s13, 4  ;;  %s718_s14 = sshll.u32 %s1433_s12, 4  ;;  %s717_s3 = int_to_ptr.vmem [resolvable:$true] %s716_s3  ;;  %s719_s14 = int_to_ptr.hbm [resolvable:$true] %s718_s14 }
  0x30   :  { %222 = vmatpush.bf16.msra.mxu0 %v804_v2 }
  0x33   :  { %775 = vmatmul.msk.bf16.vlgmr.msra.gmra.mxu0 %vm211_vm0, %v182_v3 }
  0xb0   :  { %v224_v5 = vpop.f32.mrf.mxu0 }
  0xb1   :  { %v225_v6 = vadd.f32 %v870_v4, %v224_v5  ;;  %v871_v4 = vld [vmem:[%s1429_s8] ss:$0 sm:$0xff]  ;;  %s1219_s8 = smov 96  }
  0xb3   :  { %873 = vtanh.f32 %v225_v6  ;;  %v776_v10 = vmul.f32 -1.442695, %v225_v6  ;;  %v823_v6 = vunpack.c.l.bf16 %v846_v50 }
  0xb5   :  { %875 = vpow2.f32 %v776_v10 }
  0xb8   :  { %v226_v7 = vpop.f32.mrf.mxu0 }
  0xb9   :  { %v874_v8 = vpop.eup %873 }
  0xba   :  { %254 = vrot.lane.b32.xlu0 %v874_v8, %s1209_s1 }
  0xbb   :  { %v876_v11 = vpop.eup %875 }
  0xbc   :  { %v231_v12 = vadd.f32 1.0, %v876_v11 }
  0xbe   :  { %877 = vrcp.f32 %v231_v12  ;;  %v243_v18 = vand.u32 2147483648, %v231_v12  ;;  %vm237_vm2 = vweird.f32 %v231_v12  ;;  %v241_v19 = vand.u32 2147483647, %v231_v12 }
  0xc0   :  { %v244_v21 = vor.u32 1.1754944e-38, %v243_v18  ;;  %vm242_vm4 = vcmp.eq.f32.partialorder %v241_v19, 8.507059e+37 }
  0xc2   :  { %249 = vrot.lane.b32.xlu0 %v181_v9, %s1218_s26 }
  0xc4   :  { %v878_v13 = vpop.eup %877 }
  0xc5   :  { %v233_v14 = vmul.f32 %v878_v13, %v231_v12  ;;  %vm238_vm1 = vweird.f32 %v878_v13 }
  0xc6   :  { %vm239_vm3 = vmor %vm237_vm2, %vm238_vm1 }
  0xc7   :  { %v234_v15 = vsub.f32 1.0, %v233_v14 }
  0xc9   :  { %v235_v16 = vmul.f32 %v878_v13, %v234_v15 }
  0xcb   :  { %v236_v17 = vadd.f32 %v878_v13, %v235_v16 }
  0xcd   :  { %v240_v20 = vsel %vm239_vm3, %v878_v13, %v236_v17 }
  0xce   :  { %v245_v23 = vsel %vm242_vm4, %v244_v21, %v240_v20 }
 0x12c   :  { %v255_v22 = vpop.permute.xlu0 %254 }
 0x12d   :  { %v257_v24 = vmul.f32 %v255_v22, %v245_v23  ;;  %v828_v22 = vunpack.c.h.bf16 %v847_v41 }
 0x12f   :  { %259 = vrot.lane.b32.xlu1 %v257_v24, %s1218_s26 }
 0x134   :  { %v250_v25 = vpop.permute.xlu0 %249 }
 0x135   :  { %v252_v26 = vmul.f32 %v250_v25, %v245_v23 }
 0x1a1   :  { %v260_v27 = vpop.permute.xlu1 %259 }
 0x1a2   :  { %v1349_v28 = vadd.f32 %v260_v27, %v252_v26 }
 0x1a4   :  { %879 = vtanh.f32 %v1349_v28 }
 0x1aa   :  { %v880_v29 = vpop.eup %879 }
 0x1ab   :  { %265 = vrot.lane.b32.xlu1 %v880_v29, %s1209_s1 }
 0x21d   :  { %v266_v34 = vpop.permute.xlu1 %265 }
 0x21e   :  { %v1353_v35 = vmul.f32 %v266_v34, %v245_v23 }
 0x220   :  { %v280_v36 = vpack.c.bf16 %v1353_v35, %v1353_v35 }
 0x222   :  { %286 = vrot.lane.b32.xlu2 %v280_v36, %s1218_s26 }
 0x27c   :  { %v287_v37 = vpop.permute.xlu2 %286 }
 0x27d   :  { %785 = vmatmul.msk.bf16.vlgmr.msra.gmra.mxu1 %vm273_vm5, %v287_v37  ;;  %803 = vmatmul.msk.bf16.vlgmr.msra.gmra.mxu3 %vm273_vm5, %v287_v37 }
 0x2fa   :  { %v312_v42 = vpop.f32.mrf.mxu1 }
 0x2fb   :  { %v340_v46 = vperm.slane %v312_v42, 0  ;;  %v326_v47 = vrot.slane %v312_v42, 2  ;;  %v325_v48 = vrot.slane %v312_v42, 1  ;;  %v327_v49 = vrot.slane %v312_v42, 3 }
 0x2fc   :  { %v330_v52 = vrot.slane %v312_v42, 6  ;;  %v329_v53 = vrot.slane %v312_v42, 5  ;;  %v328_v61 = vrot.slane %v312_v42, 4  ;;  %v331_v12 = vrot.slane %v312_v42, 7 }
 0x2fd   :  { %v356_v54 = vadd.f32 %v815_v40, %v340_v46  ;;  %v342_v55 = vperm.slane %v326_v47, 0  ;;  %v341_v56 = vperm.slane %v325_v48, 0  ;;  %v343_v57 = vperm.slane %v327_v49, 0 }
 0x2fe   :  { %v346_v58 = vperm.slane %v330_v52, 0  ;;  %v345_v60 = vperm.slane %v329_v53, 0  ;;  %v344_v7 = vperm.slane %v328_v61, 0  ;;  %v347_v23 = vperm.slane %v331_v12, 0 }
 0x2ff   :  { %881 = vtanh.f32 %v356_v54  ;;  %v358_v62 = vadd.f32 %v819_v43, %v342_v55  ;;  %v357_v63 = vadd.f32 %v816_v44, %v341_v56  ;;  %v359_v0 = vadd.f32 %v820_v45, %v343_v57 }
 0x300   :  { %v1360_v1 = vpop.f32.mrf.mxu3  ;;  %v362_v2 = vadd.f32 %v827_v51, %v346_v58  ;;  %v361_v5 = vadd.f32 %v824_v59, %v345_v60  ;;  %v360_v11 = vadd.f32 %v823_v6, %v344_v7  ;;  %v363_v29 = vadd.f32 %v828_v22, %v347_v23  ;;  %v465_v22 = vld [vmem:[#allocation10] sm:$0xff] }
 0x301   :  { %883 = vtanh.f32 %v358_v62  ;;  %v408_v40 = vlaneseq }
 0x302   :  { %v314_v3 = vpop.f32.mrf.mxu1  ;;  %885 = vtanh.f32 %v357_v63 }
 0x303   :  { %887 = vtanh.f32 %v359_v0  ;;  %v409_v41 = vshrl.u32 %v408_v40, 7  ;;  %v420_v45 = vand.u32 127, %v408_v40 }
 0x304   :  { %889 = vtanh.f32 %v362_v2 }
 0x305   :  { %v882_v8 = vpop.eup %881  ;;  %891 = vtanh.f32 %v361_v5  ;;  %869 = vset.pattern.permute.xlu0 %v409_v41  ;;  %868 = vset.pattern.permute.xlu2 %v409_v41  ;;  %vm410_vm13 = vcmp.lt.s32.totalorder %v409_v41, 2 }
 0x306   :  { %v376_v9 = vmul.f32 %v882_v8, %v871_v4  ;;  %893 = vtanh.f32 %v360_v11  ;;  %867 = vset.pattern.permute.xlu1 %v409_v41 }
 0x307   :  { %v884_v10 = vpop.eup %883  ;;  %895 = vtanh.f32 %v363_v29 }
 0x308   :  { %v886_v13 = vpop.eup %885  ;;  %v700_v14 = vpop.f32.mrf.mxu3  ;;  %v384_v15 = vsel %vm273_vm5, %v376_v9, 0.0  ;;  %v378_v16 = vmul.f32 %v884_v10, %v871_v4 }
 0x309   :  { %v888_v17 = vpop.eup %887  ;;  %385 = vadd.xlane.f32.xlu2 %v384_v15  ;;  %v377_v18 = vmul.f32 %v886_v13, %v871_v4 }
 0x30a   :  { %v390_v19 = vsel %vm273_vm5, %v378_v16, 0.0  ;;  %v890_v20 = vpop.eup %889  ;;  %v379_v25 = vmul.f32 %v888_v17, %v871_v4 }
 0x30b   :  { %391 = vadd.xlane.f32.xlu1 %v390_v19  ;;  %v387_v21 = vsel %vm273_vm5, %v377_v18, 0.0  ;;  %v892_v24 = vpop.eup %891  ;;  %v382_v26 = vmul.f32 %v890_v20, %v871_v4 }
 0x30c   :  { %388 = vadd.xlane.f32.xlu0 %v387_v21  ;;  %v381_v27 = vmul.f32 %v892_v24, %v871_v4  ;;  %v393_v30 = vsel %vm273_vm5, %v379_v25, 0.0  ;;  %v894_v31 = vpop.eup %893 }
 0x30d   :  { %v402_v32 = vsel %vm273_vm5, %v382_v26, 0.0  ;;  %v380_v34 = vmul.f32 %v894_v31, %v871_v4  ;;  %v896_v37 = vpop.eup %895 }
 0x30e   :  { %v399_v33 = vsel %vm273_vm5, %v381_v27, 0.0  ;;  %v383_v38 = vmul.f32 %v896_v37, %v871_v4 }
 0x30f   :  { %v396_v36 = vsel %vm273_vm5, %v380_v34, 0.0 }
 0x310   :  { %v405_v39 = vsel %vm273_vm5, %v383_v38, 0.0 }
 0x311   :  { %394 = vadd.xlane.f32.xlu2 %v393_v30 }
 0x313   :  { %403 = vadd.xlane.f32.xlu1 %v402_v32 }
 0x314   :  { %400 = vadd.xlane.f32.xlu0 %v399_v33 }
 0x319   :  { %397 = vadd.xlane.f32.xlu2 %v396_v36 }
 0x321   :  { %406 = vadd.xlane.f32.xlu2 %v405_v39 }
 0x37c   :  { %v386_v42 = vpop.xlane.xlu2 %385 }
 0x37d   :  { %v421_v48 = vperm.slane %v386_v42, %v420_v45  ;;  %v830_v42 = vld [vmem:[#allocation7] sm:$0xff]  }
 0x37e   :  { %v392_v46 = vpop.xlane.xlu1 %391 }
 0x37f   :  { %v389_v43 = vpop.xlane.xlu0 %388  ;;  %v423_v49 = vperm.slane %v392_v46, %v420_v45 }
 0x380   :  { %v422_v47 = vperm.slane %v389_v43, %v420_v45  ;;  %v832_v43 = vunpack.c.h.bf16 %v830_v42 }
 0x382   :  { %v430_v50 = vsel %vm429_vm6, %v422_v47, %v421_v48  ;;  %v849_v47 = vld [vmem:[#allocation7 + $0x10] sm:$0xff]   ;;  %v831_v48 = vunpack.c.l.bf16 %v830_v42 }
 0x383   :  { %v432_v54 = vsel %vm431_vm7, %v423_v49, %v430_v50  ;;  %v839_v49 = vunpack.c.l.bf16 %v849_v47 }
 0x384   :  { %v395_v44 = vpop.xlane.xlu2 %394 }
 0x385   :  { %v424_v51 = vperm.slane %v395_v44, %v420_v45 }
 0x386   :  { %v404_v58 = vpop.xlane.xlu1 %403 }
 0x387   :  { %v401_v55 = vpop.xlane.xlu0 %400  ;;  %v434_v56 = vsel %vm433_vm8, %v424_v51, %v432_v54  ;;  %v427_v61 = vperm.slane %v404_v58, %v420_v45  ;;  %v1387_v51 = vld [vmem:[#allocation7 + $0x18] sm:$0xff]  }
 0x388   :  { %v426_v59 = vperm.slane %v401_v55, %v420_v45  ;;  %v843_v58 = vunpack.c.l.bf16 %v1387_v51  ;;  %v844_v42 = vunpack.c.h.bf16 %v1387_v51 }
 0x38c   :  { %v398_v52 = vpop.xlane.xlu2 %397 }
 0x38d   :  { %v425_v53 = vperm.slane %v398_v52, %v420_v45 }
 0x38f   :  { %v436_v57 = vsel %vm435_vm9, %v425_v53, %v434_v56 }
 0x390   :  { %v438_v60 = vsel %vm437_vm10, %v426_v59, %v436_v57 }
 0x391   :  { %v440_v0 = vsel %vm439_vm11, %v427_v61, %v438_v60 }
 0x394   :  { %v407_v62 = vpop.xlane.xlu2 %406 }
 0x395   :  { %v428_v63 = vperm.slane %v407_v62, %v420_v45  ;;  %v848_v45 = vld [vmem:[#allocation7 + $0x8] sm:$0xff]  }
 0x397   :  { %v442_v2 = vsel %vm441_vm12, %v428_v63, %v440_v0  ;;  %v836_v63 = vunpack.c.h.bf16 %v848_v45 }
 0x398   :  { %v444_v3 = vsel %vm410_vm13, %v442_v2, -1e+30 }
 0x399   :  { %v446_v4 = vsel %vm445_vm14, %v444_v3, -inf }
 0x39a   :  { %v447_v5 = vrot.slane %v446_v4, 4 }
 0x39c   :  { %v448_v6 = vmax.f32 %v446_v4, %v447_v5 }
 0x39e   :  { %v449_v7 = vrot.slane %v448_v6, 2 }
 0x3a0   :  { %v450_v8 = vmax.f32 %v448_v6, %v449_v7 }
 0x3a2   :  { %v451_v9 = vrot.slane %v450_v8, 1 }
 0x3a4   :  { %v452_v10 = vmax.f32 %v450_v8, %v451_v9 }
 0x3a6   :  { %v453_v11 = vsub.f32 %v444_v3, %v452_v10 }
 0x3a8   :  { %v454_v12 = vmul.f32 1.442695, %v453_v11 }
 0x3aa   :  { %897 = vpow2.f32 %v454_v12 }
 0x3b0   :  { %v898_v13 = vpop.eup %897 }
 0x3b1   :  { %v456_v14 = vsel %vm445_vm14, %v898_v13, 0.0 }
 0x3b2   :  { %v457_v15 = vrot.slane %v456_v14, 4 }
 0x3b4   :  { %v458_v16 = vadd.f32 %v457_v15, %v456_v14 }
 0x3b6   :  { %v459_v17 = vrot.slane %v458_v16, 2 }
 0x3b8   :  { %v460_v18 = vadd.f32 %v459_v17, %v458_v16 }
 0x3ba   :  { %v461_v19 = vrot.slane %v460_v18, 1 }
 0x3bc   :  { %v462_v20 = vadd.f32 %v461_v19, %v460_v18  ;;  %v811_v18 = vld [vmem:[#allocation16] sm:$0xff] }
 0x3be   :  { %899 = vrcp.f32 %v462_v20 }
 0x3c4   :  { %v900_v21 = vpop.eup %899 }
 0x3c5   :  { %v464_v23 = vmul.f32 %v900_v21, %v898_v13  ;;  %v812_v13 = vld [vmem:[#allocation16 + $0x8] sm:$0xff]  ;;  %v840_v21 = vunpack.c.h.bf16 %v849_v47 }
 0x3c6   :  { %670 = vmatpush.bf16.msra.mxu2 %v812_v13 }
 0x3c7   :  { %v466_v24 = vmul.f32 %v465_v22, %v464_v23 }
 0x3c9   :  { %v467_v25 = vsel %vm445_vm14, %v466_v24, 0.0 }
 0x3ca   :  { %468 = vadd.xlane.f32.xlu0 %v467_v25  ;;  %671 = vmatpush.bf16.msra.mxu2 %v811_v18 }
 0x43d   :  { %v469_v26 = vpop.xlane.xlu0 %468 }
 0x43e   :  { %v470_v27 = vadd.f32 1e-05, %v469_v26 }
 0x440   :  { %901 = vrcp.f32 %v470_v27 }
 0x446   :  { %v902_v29 = vpop.eup %901 }
 0x447   :  { %v472_v30 = vmul.f32 %v902_v29, %v466_v24 }
 0x449   :  { %v487_v31 = vperm.slane %v472_v30, 2  ;;  %v480_v32 = vperm.slane %v472_v30, 1  ;;  %v473_v33 = vperm.slane %v472_v30, 0  ;;  %v501_v34 = vperm.slane %v472_v30, 4 }
 0x44a   :  { %v494_v36 = vperm.slane %v472_v30, 3  ;;  %v515_v37 = vperm.slane %v472_v30, 6  ;;  %v508_v38 = vperm.slane %v472_v30, 5  ;;  %v522_v39 = vperm.slane %v472_v30, 7 }
 0x44b   :  { %492 = vperm.xlu0 %869, %v487_v31   ;;  %485 = vperm.xlu2 %868, %v480_v32  }
 0x44c   :  { %478 = vperm.xlu1 %867, %v473_v33  }
 0x453   :  { %276 = vrot.lane.b32.xlu0 %v1349_v28, %s1219_s8  ;;  %506 = vperm.xlu2 %868, %v501_v34   ;;  %v835_v28 = vunpack.c.l.bf16 %v848_v45 }
 0x454   :  { %499 = vperm.xlu1 %867, %v494_v36  }
 0x45b   :  { %520 = vperm.xlu2 %868, %v515_v37  }
 0x45c   :  { %513 = vperm.xlu1 %867, %v508_v38  }
 0x463   :  { %270 = vrot.lane.b32.xlu2 %v1353_v35, %s1218_s26 }
 0x464   :  { %527 = vperm.xlu1 %867, %v522_v39  }
 0x4a5   :  { %v486_v40 = vpop.permute.xlu2 %485 }
 0x4a6   :  { %v546_v46 = vmul.f32 %v832_v43, %v486_v40 }
 0x4a8   :  { %v560_v50 = vsel %vm273_vm5, %v546_v46, 0.0 }
 0x4a9   :  { %v561_v56 = vrot.slane %v560_v50, 4 }
 0x4ab   :  { %v562_v0 = vadd.f32 %v561_v56, %v560_v50 }
 0x4ad   :  { %v507_v41 = vpop.permute.xlu2 %506  ;;  %v563_v11 = vrot.slane %v562_v0, 2 }
 0x4ae   :  { %v549_v57 = vmul.f32 %v839_v49, %v507_v41 }
 0x4af   :  { %v564_v22 = vadd.f32 %v563_v11, %v562_v0 }
 0x4b0   :  { %v581_v2 = vsel %vm273_vm5, %v549_v57, 0.0 }
 0x4b1   :  { %v582_v9 = vrot.slane %v581_v2, 4  ;;  %v565_v32 = vrot.slane %v564_v22, 1 }
 0x4b3   :  { %v583_v19 = vadd.f32 %v582_v9, %v581_v2  ;;  %v566_v43 = vadd.f32 %v565_v32, %v564_v22 }
 0x4b5   :  { %v521_v44 = vpop.permute.xlu2 %520  ;;  %v584_v29 = vrot.slane %v583_v19, 2 }
 0x4b6   :  { %v551_v3 = vmul.f32 %v843_v58, %v521_v44 }
 0x4b7   :  { %v585_v40 = vadd.f32 %v584_v29, %v583_v19 }
 0x4b8   :  { %v595_v12 = vsel %vm273_vm5, %v551_v3, 0.0 }
 0x4b9   :  { %v596_v20 = vrot.slane %v595_v12, 4  ;;  %v586_v49 = vrot.slane %v585_v40, 1 }
 0x4bb   :  { %v597_v30 = vadd.f32 %v596_v20, %v595_v12  ;;  %v587_v51 = vadd.f32 %v586_v49, %v585_v40 }
 0x4bd   :  { %v493_v52 = vpop.permute.xlu0 %492  ;;  %v271_v53 = vpop.permute.xlu2 %270  ;;  %v598_v41 = vrot.slane %v597_v30, 2 }
 0x4be   :  { %v547_v54 = vmul.f32 %v835_v28, %v493_v52  ;;  %274 = vst.msk [vmem:[#allocation18] sm:$0xff] %vm273_vm5, %v271_v53  ;;  %v479_v35 = vpop.permute.xlu1 %478  ;;  %v614_v53 = vpack.c.bf16 %v566_v43, %v566_v43 }
 0x4bf   :  { %v545_v55 = vmul.f32 %v831_v48, %v479_v35  ;;  %v599_v50 = vadd.f32 %v598_v41, %v597_v30  ;;  %732 = dma.vmem_to_hbm [thread:$0]  %s728_s23, 128, %s730_s21, [#allocation19]  }
 0x4c0   :  { %v567_v59 = vsel %vm273_vm5, %v547_v54, 0.0 }
 0x4c1   :  { %v568_v60 = vrot.slane %v567_v59, 4  ;;  %v553_v61 = vsel %vm273_vm5, %v545_v55, 0.0 }
 0x4c2   :  { %v554_v62 = vrot.slane %v553_v61, 4 }
 0x4c3   :  { %v569_v5 = vadd.f32 %v568_v60, %v567_v59  ;;  %v600_v60 = vrot.slane %v599_v50, 1 }
 0x4c4   :  { %v555_v4 = vadd.f32 %v554_v62, %v553_v61  ;;  %v634_v61 = vunpack.c.l.b16 %v614_v53 }
 0x4c5   :  { %v277_v6 = vpop.permute.xlu0 %276  ;;  %v570_v14 = vrot.slane %v569_v5, 2 }
 0x4c6   :  { %v556_v7 = vrot.slane %v555_v4, 2  ;;  %279 = vst.msk [vmem:[#allocation20] sm:$0xff] %vm273_vm5, %v277_v6  ;;  %v500_v8 = vpop.permute.xlu1 %499  ;;  %v617_v6 = vpack.c.bf16 %v587_v51, %v587_v51 }
 0x4c7   :  { %v548_v10 = vmul.f32 %v836_v63, %v500_v8  ;;  %v571_v24 = vadd.f32 %v570_v14, %v569_v5  ;;  %743 = dma.vmem_to_hbm [thread:$0]  %s739_s28, 128, %s741_s27, [#allocation19]  }
 0x4c8   :  { %v557_v16 = vadd.f32 %v556_v7, %v555_v4  ;;  %v601_v7 = vadd.f32 %v600_v60, %v599_v50  ;;  %v637_v13 = vunpack.c.l.b16 %v617_v6 }
 0x4c9   :  { %v574_v15 = vsel %vm273_vm5, %v548_v10, 0.0  ;;  %v572_v34 = vrot.slane %v571_v24, 1 }
 0x4ca   :  { %v575_v17 = vrot.slane %v574_v15, 4  ;;  %v558_v25 = vrot.slane %v557_v16, 1  ;;  %v619_v14 = vpack.c.bf16 %v601_v7, %v601_v7 }
 0x4cb   :  { %v573_v45 = vadd.f32 %v572_v34, %v571_v24  ;;  %v872_v24 = vld [vmem:[%s1432_s11] ss:$0 sm:$0xff] }
 0x4cc   :  { %v576_v23 = vadd.f32 %v575_v17, %v574_v15  ;;  %v559_v37 = vadd.f32 %v558_v25, %v557_v16  ;;  %v639_v19 = vunpack.c.l.b16 %v619_v14 }
 0x4cd   :  { %v615_v35 = vpack.c.bf16 %v573_v45, %v573_v45 }
 0x4ce   :  { %v577_v26 = vrot.slane %v576_v23, 2  ;;  %v514_v27 = vpop.permute.xlu1 %513  ;;  %v613_v46 = vpack.c.bf16 %v559_v37, %v559_v37 }
 0x4cf   :  { %v550_v31 = vmul.f32 %v840_v21, %v514_v27  ;;  %v635_v0 = vunpack.c.l.b16 %v615_v35 }
 0x4d0   :  { %v578_v33 = vadd.f32 %v577_v26, %v576_v23  ;;  %v633_v56 = vunpack.c.l.b16 %v613_v46 }
 0x4d1   :  { %v588_v36 = vsel %vm273_vm5, %v550_v31, 0.0 }
 0x4d2   :  { %v579_v38 = vrot.slane %v578_v33, 1  ;;  %v589_v39 = vrot.slane %v588_v36, 4  ;;  %v641_v2 = vsel %vm429_vm6, %v634_v61, %v633_v56 }
 0x4d3   :  { %v642_v9 = vsel %vm431_vm7, %v635_v0, %v641_v2 }
 0x4d4   :  { %v590_v44 = vadd.f32 %v589_v39, %v588_v36  ;;  %v580_v47 = vadd.f32 %v579_v38, %v578_v33 }
 0x4d6   :  { %v591_v28 = vrot.slane %v590_v44, 2  ;;  %v528_v48 = vpop.permute.xlu1 %527  ;;  %v616_v57 = vpack.c.bf16 %v580_v47, %v580_v47 }
 0x4d7   :  { %v552_v52 = vmul.f32 %v844_v42, %v528_v48 }
 0x4d8   :  { %v592_v54 = vadd.f32 %v591_v28, %v590_v44  ;;  %v636_v3 = vunpack.c.l.b16 %v616_v57 }
 0x4d9   :  { %v602_v55 = vsel %vm273_vm5, %v552_v52, 0.0 }
 0x4da   :  { %v593_v58 = vrot.slane %v592_v54, 1  ;;  %v603_v59 = vrot.slane %v602_v55, 4  ;;  %v643_v10 = vsel %vm433_vm8, %v636_v3, %v642_v9 }
 0x4db   :  { %v644_v16 = vsel %vm435_vm9, %v637_v13, %v643_v10 }
 0x4dc   :  { %v594_v62 = vadd.f32 %v593_v58, %v592_v54  ;;  %v604_v63 = vadd.f32 %v603_v59, %v602_v55 }
 0x4de   :  { %v618_v4 = vpack.c.bf16 %v594_v62, %v594_v62  ;;  %v605_v5 = vrot.slane %v604_v63, 2 }
 0x4e0   :  { %v606_v8 = vadd.f32 %v605_v5, %v604_v63  ;;  %v638_v11 = vunpack.c.l.b16 %v618_v4 }
 0x4e2   :  { %v607_v12 = vrot.slane %v606_v8, 1  ;;  %v645_v18 = vsel %vm437_vm10, %v638_v11, %v644_v16 }
 0x4e3   :  { %v646_v21 = vsel %vm439_vm11, %v639_v19, %v645_v18 }
 0x4e4   :  { %v608_v15 = vadd.f32 %v607_v12, %v606_v8 }
 0x4e6   :  { %v620_v17 = vpack.c.bf16 %v608_v15, %v608_v15 }
 0x4e8   :  { %v640_v20 = vunpack.c.l.b16 %v620_v17 }
 0x4ea   :  { %v647_v22 = vsel %vm441_vm12, %v640_v20, %v646_v21 }
 0x4eb   :  { %v648_v23 = vpack.c.b16 %v647_v22, %v647_v22 }
 0x4ed   :  { %794 = vmatmul.msk.bf16.vlgmr.msra.gmra.mxu2 %vm273_vm5, %v648_v23 }
 0x570   :  { %v673_v25 = vpop.f32.mrf.mxu2 }
 0x571   :  { %v699_v26 = vadd.f32 %v1360_v1, %v673_v25 }
 0x573   :  { %v706_v27 = vadd.f32 %v872_v24, %v699_v26 }
 0x575   :  { %903 = vtanh.f32 %v706_v27 }
 0x578   :  { %v675_v29 = vpop.f32.mrf.mxu2 }
 0x57b   :  { %v904_v30 = vpop.eup %903 }
 0x57c   :  { %v708_v31 = vpack.c.bf16 %v904_v30, %v904_v30 }
 0x57e   :  { %710 = vst.msk [vmem:[#allocation17] sm:$0xf] %vm709_vm15, %v708_v31 }
 0x57f   :  { %721 = dma.vmem_to_hbm [thread:$0]  %s717_s3, 64, %s719_s14, [#allocation4]  }
 0x580   :  { %1203 = dma.done.wait [#allocation4], 64  }
 0x581   :  { %1204 = vsyncadd [#allocation4], 4294967232 }
 0x582   :  { %1205 = dma.done.wait [#allocation19], 256  }
 0x583   :  { %1206 = vsyncadd [#allocation19], 4294967040 }
 0x584   :  { %756 = vsyncpa [#allocation3], 1 }
 0x585   :  { %757 = vsyncpa [#allocation6], 1 }
 0x586   :  { %758 = vsyncpa [#allocation9], 1 }
 0x587   :  { %759 = vsyncpa [#allocation12], 1 }
 0x588   :  { %760 = vsyncpa [#allocation15], 1 }
 0x589   :  { %761 = vsyncpa [#allocation4], 1 }
 0x58a   :  { %762 = vsyncpa [#allocation19], 1 }

</bundles_post_ra>
